<compile_context>
chip_gen: v6e
topology: v6e:2x2x1
jax: 0.10.0
libtpu: 0.0.40
codegen_flags: <defaults>
</compile_context>

<pallas_src>
import jax
import jax.numpy as jnp
import numpy as np
from jax.experimental import pallas as pl
from jax.experimental.pallas import tpu as pltpu

_LANE = 128
_SUBLANE = 8


def _choose_slab(total):
    """Pick a sublane/lane-dense (rows, lane) layout for `total` elements."""
    unit = _SUBLANE * _LANE  # 1024
    padded = ((total + unit - 1) // unit) * unit
    lane = _LANE
    for cand in (8192, 4096, 2048, 1024, 512, 256, _LANE):
        if padded % cand == 0 and (padded // cand) % _SUBLANE == 0:
            lane = cand
            break
    return padded, padded // lane, lane


def _choose_tile_rows(rows, lane):
    """Largest row tile (multiple of 8, divides rows) with <= ~4 MiB / buffer."""
    target_rows = max(_SUBLANE,
                      ((4 * 1024 * 1024 // 4) // lane) // _SUBLANE * _SUBLANE)
    tr = min(rows, target_rows)
    while rows % tr != 0:
        tr -= _SUBLANE
    return tr


def _reduce_kernel(x_ref, s_ref, ss_ref):
    """Fused sum / sum-of-squares accumulation over row tiles."""
    i = pl.program_id(0)

    @pl.when(i == 0)
    def _init():
        s_ref[...] = jnp.zeros_like(s_ref)
        ss_ref[...] = jnp.zeros_like(ss_ref)

    x = x_ref[...].astype(jnp.float32)
    s_ref[...] += jnp.sum(x, keepdims=True)
    ss_ref[...] += jnp.sum(x * x, keepdims=True)


def _flow_kernel(params_ref, x_ref, o_ref):
    """Elementwise OptAEGV3 'flow' math on one (tile_rows, lane) block.

    params_ref (SMEM, f32[8]): [vx, vy, wx, wy, afactor, mfactor, mean, rstd]
    """
    vx = params_ref[0]
    vy = params_ref[1]
    wx = params_ref[2]
    wy = params_ref[3]
    afactor = params_ref[4]
    mfactor = params_ref[5]
    mean = params_ref[6]
    rstd = params_ref[7]

    d = (x_ref[...].astype(jnp.float32) - mean) * rstd

    # flow(a, b, t) = t * (1 + b) + a
    v = d * (1.0 + vy) + vx
    w = d * (1.0 + wy) + wx

    # sigmoid(w) == 0.5 * tanh(0.5 * w) + 0.5  (single EUP op, no divide)
    sig_w = 0.5 * jnp.tanh(0.5 * w) + 0.5

    # torch sums over the trailing singleton dim of data.view(b, -1, 1),
    # which is a no-op, so dx is purely elementwise.
    dx = afactor * (v * sig_w)
    dy = mfactor * jnp.tanh(d)

    o_ref[...] = (d * (1.0 + dy) + dx).astype(o_ref.dtype)


@jax.jit
def optaeg_v3_forward(x, params):
    """x: [B, C, H, W] (any float dtype). params: f32[6]. Returns same shape."""
    shape = x.shape
    total = x.size
    padded, rows, lane = _choose_slab(total)
    tile_rows = _choose_tile_rows(rows, lane)
    n_tiles = rows // tile_rows

    flat = x.reshape(-1)
    if padded != total:
        flat = jnp.pad(flat, (0, padded - total))   # zeros: no effect on sums
    slab = flat.reshape(rows, lane)

    tile_bytes = tile_rows * lane * 4
    vmem_limit = min(max(8 * tile_bytes + (2 << 20), 8 << 20), 48 << 20)

    # ---- phase 1: tiled fused reduction (sum, sumsq) ----
    s, ss = pl.pallas_call(
        _reduce_kernel,
        out_shape=(jax.ShapeDtypeStruct((1, 1), jnp.float32),
                   jax.ShapeDtypeStruct((1, 1), jnp.float32)),
        grid_spec=pltpu.PrefetchScalarGridSpec(
            num_scalar_prefetch=0,
            grid=(n_tiles,),
            in_specs=[pl.BlockSpec((tile_rows, lane), lambda i: (i, 0))],
            out_specs=(pl.BlockSpec((1, 1), lambda i: (0, 0)),
                       pl.BlockSpec((1, 1), lambda i: (0, 0))),
        ),
        compiler_params=pltpu.CompilerParams(
            dimension_semantics=("arbitrary",),
            vmem_limit_bytes=vmem_limit),
    )(slab)

    n = jnp.float32(total)
    mean = s[0, 0] / n
    denom = jnp.float32(max(total - 1, 1))          # torch .std() is unbiased
    var = (ss[0, 0] - n * mean * mean) / denom
    rstd = jax.lax.rsqrt(var)

    params8 = jnp.concatenate(
        [params[:6].astype(jnp.float32), jnp.stack([mean, rstd])])

    # ---- phase 2: tiled elementwise flow, output aliases the slab ----
    out_slab = pl.pallas_call(
        _flow_kernel,
        out_shape=jax.ShapeDtypeStruct((rows, lane), x.dtype),
        grid_spec=pltpu.PrefetchScalarGridSpec(
            num_scalar_prefetch=1,                  # params8 -> SMEM
            grid=(n_tiles,),
            in_specs=[pl.BlockSpec((tile_rows, lane), lambda i, p: (i, 0))],
            out_specs=pl.BlockSpec((tile_rows, lane), lambda i, p: (i, 0)),
        ),
        input_output_aliases={1: 0},                # reuse the slab's HBM buffer
        compiler_params=pltpu.CompilerParams(
            dimension_semantics=("parallel",),
            vmem_limit_bytes=vmem_limit),
    )(params8, slab)

    return out_slab.reshape(-1)[:total].reshape(shape)


def optaeg_v3_reference(x, params):
    """Pure-JAX reference mirroring the PyTorch forward exactly."""
    vx, vy, wx, wy, afactor, mfactor = [params[i] for i in range(6)]
    shape = x.shape
    b = shape[0]
    d = x.reshape(b, -1).astype(jnp.float32)
    d = d - jnp.mean(d)
    d = d / jnp.std(d, ddof=1)                      # torch .std() is unbiased
    flow = lambda a, m, t: t * (1.0 + m) + a
    v = flow(vx, vy, d[:, :, None])
    w = flow(wx, wy, d[:, :, None])
    dx = afactor * jnp.sum(v * jax.nn.sigmoid(w), axis=-1)
    dy = mfactor * jnp.tanh(d)
    d = flow(dx, dy, d)
    return d.reshape(shape)


if __name__ == "__main__":
    key = jax.random.PRNGKey(0)
    k_x, k_p = jax.random.split(key)

    # Small NCHW input, consistent with how this module is used on conv maps.
    B, C, H, W = 2, 4, 16, 16
    x = jax.random.normal(k_x, (B, C, H, W), dtype=jnp.float32)

    # Parameters: module __init__ values (vx=0, vy=1, wx=0, wy=1, afactor=0,
    # mfactor=1) plus a small deterministic perturbation so every term in the
    # forward pass is exercised. Shapes (1,1,1)/(1,1) collapse to scalars.
    init = jnp.array([0.0, 1.0, 0.0, 1.0, 0.0, 1.0], dtype=jnp.float32)
    params = init + 0.1 * jax.random.normal(k_p, (6,), dtype=jnp.float32)

    out = jax.block_until_ready(optaeg_v3_forward(x, params))
    ref = jax.block_until_ready(optaeg_v3_reference(x, params))

    # Fused sum/sumsq variance + tanh-form sigmoid change rounding slightly.
    np.testing.assert_allclose(np.asarray(out), np.asarray(ref),
                               rtol=2e-5, atol=2e-5)

    print("KERNEL_OK")
</pallas_src>

<mosaic_0001>
module attributes {stable_mosaic.version = 11 : i64} {
  func.func @_reduce_kernel(%arg0: i32, %arg1: memref<8x256xf32, #tpu.memory_space<vmem>>, %arg2: memref<1x1xf32, #tpu.memory_space<vmem>>, %arg3: memref<1x1xf32, #tpu.memory_space<vmem>>) attributes {dimension_semantics = [#tpu.dimension_semantics<arbitrary>], iteration_bounds = array<i64: 1>, scalar_prefetch = 0 : i64, scratch_operands = 0 : i64, tpu.core_type = #tpu.core_type<tc>, window_params = [{transform_indices = @transform_0, window_bounds = array<i64: 8, 256>}, {pipeline_mode = #tpu.pipeline_mode<synchronous>, transform_indices = @transform_1, window_bounds = array<i64: 1, 1>}, {pipeline_mode = #tpu.pipeline_mode<synchronous>, transform_indices = @transform_2, window_bounds = array<i64: 1, 1>}]} {
    %c0_i32 = arith.constant 0 : i32
    %0 = arith.cmpi eq, %arg0, %c0_i32 : i32
    %1 = arith.extui %0 : i1 to i32
    %c0_i32_0 = arith.constant 0 : i32
    %2 = arith.cmpi ne, %1, %c0_i32_0 : i32
    scf.if %2 {
      %cst_11 = arith.constant 0.000000e+00 : f32
      %21 = vector.broadcast %cst_11 : f32 to vector<1x1xf32>
      %c0_12 = arith.constant 0 : index
      %c0_13 = arith.constant 0 : index
      %22 = vector.load %arg2[%c0_12, %c0_13] : memref<1x1xf32, #tpu.memory_space<vmem>>, vector<1x1xf32>
      tpu.vector_store %arg2[%c0_12, %c0_13], %21 {strides = array<i32>} : memref<1x1xf32, #tpu.memory_space<vmem>>, vector<1x1xf32>,
      %cst_14 = arith.constant 0.000000e+00 : f32
      %23 = vector.broadcast %cst_14 : f32 to vector<1x1xf32>
      %c0_15 = arith.constant 0 : index
      %c0_16 = arith.constant 0 : index
      %24 = vector.load %arg3[%c0_15, %c0_16] : memref<1x1xf32, #tpu.memory_space<vmem>>, vector<1x1xf32>
      tpu.vector_store %arg3[%c0_15, %c0_16], %23 {strides = array<i32>} : memref<1x1xf32, #tpu.memory_space<vmem>>, vector<1x1xf32>,
    } else {
    }
    %c0 = arith.constant 0 : index
    %c0_1 = arith.constant 0 : index
    %3 = vector.load %arg1[%c0, %c0_1] : memref<8x256xf32, #tpu.memory_space<vmem>>, vector<8x256xf32>
    %c0_2 = arith.constant 0 : index
    %c0_3 = arith.constant 0 : index
    %4 = vector.load %arg2[%c0_2, %c0_3] : memref<1x1xf32, #tpu.memory_space<vmem>>, vector<1x1xf32>
    %5 = vector.shape_cast %3 : vector<8x256xf32> to vector<1x8x256xf32>
    %cst = arith.constant dense<0.000000e+00> : vector<1xf32>
    %6 = vector.multi_reduction <add>, %5, %cst [1, 2] : vector<1x8x256xf32> to vector<1xf32>
    %7 = vector.shape_cast %6 : vector<1xf32> to vector<1x1x1xf32>
    %8 = vector.extract %7[0, 0, 0] : f32 from vector<1x1x1xf32>
    %9 = vector.broadcast %8 : f32 to vector<1x1xf32>
    %10 = arith.addf %4, %9 : vector<1x1xf32>
    %c0_4 = arith.constant 0 : index
    %c0_5 = arith.constant 0 : index
    %11 = vector.load %arg2[%c0_4, %c0_5] : memref<1x1xf32, #tpu.memory_space<vmem>>, vector<1x1xf32>
    tpu.vector_store %arg2[%c0_4, %c0_5], %10 {strides = array<i32>} : memref<1x1xf32, #tpu.memory_space<vmem>>, vector<1x1xf32>,
    %c0_6 = arith.constant 0 : index
    %c0_7 = arith.constant 0 : index
    %12 = vector.load %arg3[%c0_6, %c0_7] : memref<1x1xf32, #tpu.memory_space<vmem>>, vector<1x1xf32>
    %13 = arith.mulf %3, %3 : vector<8x256xf32>
    %14 = vector.shape_cast %13 : vector<8x256xf32> to vector<1x8x256xf32>
    %cst_8 = arith.constant dense<0.000000e+00> : vector<1xf32>
    %15 = vector.multi_reduction <add>, %14, %cst_8 [1, 2] : vector<1x8x256xf32> to vector<1xf32>
    %16 = vector.shape_cast %15 : vector<1xf32> to vector<1x1x1xf32>
    %17 = vector.extract %16[0, 0, 0] : f32 from vector<1x1x1xf32>
    %18 = vector.broadcast %17 : f32 to vector<1x1xf32>
    %19 = arith.addf %12, %18 : vector<1x1xf32>
    %c0_9 = arith.constant 0 : index
    %c0_10 = arith.constant 0 : index
    %20 = vector.load %arg3[%c0_9, %c0_10] : memref<1x1xf32, #tpu.memory_space<vmem>>, vector<1x1xf32>
    tpu.vector_store %arg3[%c0_9, %c0_10], %19 {strides = array<i32>} : memref<1x1xf32, #tpu.memory_space<vmem>>, vector<1x1xf32>,
    return
  }
  func.func @transform_0(%arg0: i32) -> (i32, i32) {
    %c0_i32 = arith.constant 0 : i32
    %c0_i32_0 = arith.constant 0 : i32
    return %arg0, %c0_i32 : i32, i32
  }
  func.func @transform_1(%arg0: i32) -> (i32, i32) {
    %c0_i32 = arith.constant 0 : i32
    %c0_i32_0 = arith.constant 0 : i32
    %c0_i32_1 = arith.constant 0 : i32
    return %c0_i32, %c0_i32_0 : i32, i32
  }
  func.func @transform_2(%arg0: i32) -> (i32, i32) {
    %c0_i32 = arith.constant 0 : i32
    %c0_i32_0 = arith.constant 0 : i32
    %c0_i32_1 = arith.constant 0 : i32
    return %c0_i32, %c0_i32_0 : i32, i32
  }
}

module attributes {stable_mosaic.version = 11 : i64} {
  func.func @_flow_kernel(%arg0: i32, %arg1: memref<8xf32, #tpu.memory_space<smem>>, %arg2: memref<8x256xf32, #tpu.memory_space<vmem>>, %arg3: memref<8x256xf32, #tpu.memory_space<vmem>>) attributes {dimension_semantics = [#tpu.dimension_semantics<parallel>], iteration_bounds = array<i64: 1>, scalar_prefetch = 1 : i64, scratch_operands = 0 : i64, tpu.core_type = #tpu.core_type<tc>, window_params = [{transform_indices = @transform_0, window_bounds = array<i64: 8, 256>}, {transform_indices = @transform_1, window_bounds = array<i64: 8, 256>}]} {
    %c0 = arith.constant 0 : index
    %0 = memref.load %arg1[%c0] : memref<8xf32, #tpu.memory_space<smem>>
    %c1 = arith.constant 1 : index
    %1 = memref.load %arg1[%c1] : memref<8xf32, #tpu.memory_space<smem>>
    %c2 = arith.constant 2 : index
    %2 = memref.load %arg1[%c2] : memref<8xf32, #tpu.memory_space<smem>>
    %c3 = arith.constant 3 : index
    %3 = memref.load %arg1[%c3] : memref<8xf32, #tpu.memory_space<smem>>
    %c4 = arith.constant 4 : index
    %4 = memref.load %arg1[%c4] : memref<8xf32, #tpu.memory_space<smem>>
    %c5 = arith.constant 5 : index
    %5 = memref.load %arg1[%c5] : memref<8xf32, #tpu.memory_space<smem>>
    %c6 = arith.constant 6 : index
    %6 = memref.load %arg1[%c6] : memref<8xf32, #tpu.memory_space<smem>>
    %c7 = arith.constant 7 : index
    %7 = memref.load %arg1[%c7] : memref<8xf32, #tpu.memory_space<smem>>
    %c0_0 = arith.constant 0 : index
    %c0_1 = arith.constant 0 : index
    %8 = vector.load %arg2[%c0_0, %c0_1] : memref<8x256xf32, #tpu.memory_space<vmem>>, vector<8x256xf32>
    %9 = vector.broadcast %6 : f32 to vector<8x256xf32>
    %10 = arith.subf %8, %9 : vector<8x256xf32>
    %11 = vector.broadcast %7 : f32 to vector<8x256xf32>
    %12 = arith.mulf %10, %11 : vector<8x256xf32>
    %cst = arith.constant 1.000000e+00 : f32
    %13 = arith.addf %cst, %1 : f32
    %14 = vector.broadcast %13 : f32 to vector<8x256xf32>
    %15 = arith.mulf %12, %14 : vector<8x256xf32>
    %16 = vector.broadcast %0 : f32 to vector<8x256xf32>
    %17 = arith.addf %15, %16 : vector<8x256xf32>
    %cst_2 = arith.constant 1.000000e+00 : f32
    %18 = arith.addf %cst_2, %3 : f32
    %19 = vector.broadcast %18 : f32 to vector<8x256xf32>
    %20 = arith.mulf %12, %19 : vector<8x256xf32>
    %21 = vector.broadcast %2 : f32 to vector<8x256xf32>
    %22 = arith.addf %20, %21 : vector<8x256xf32>
    %cst_3 = arith.constant 5.000000e-01 : f32
    %23 = vector.broadcast %cst_3 : f32 to vector<8x256xf32>
    %24 = arith.mulf %23, %22 : vector<8x256xf32>
    %25 = math.tanh %24 : vector<8x256xf32>
    %cst_4 = arith.constant 5.000000e-01 : f32
    %26 = vector.broadcast %cst_4 : f32 to vector<8x256xf32>
    %27 = arith.mulf %26, %25 : vector<8x256xf32>
    %cst_5 = arith.constant 5.000000e-01 : f32
    %28 = vector.broadcast %cst_5 : f32 to vector<8x256xf32>
    %29 = arith.addf %27, %28 : vector<8x256xf32>
    %30 = arith.mulf %17, %29 : vector<8x256xf32>
    %31 = vector.broadcast %4 : f32 to vector<8x256xf32>
    %32 = arith.mulf %31, %30 : vector<8x256xf32>
    %33 = math.tanh %12 : vector<8x256xf32>
    %34 = vector.broadcast %5 : f32 to vector<8x256xf32>
    %35 = arith.mulf %34, %33 : vector<8x256xf32>
    %cst_6 = arith.constant 1.000000e+00 : f32
    %36 = vector.broadcast %cst_6 : f32 to vector<8x256xf32>
    %37 = arith.addf %36, %35 : vector<8x256xf32>
    %38 = arith.mulf %12, %37 : vector<8x256xf32>
    %39 = arith.addf %38, %32 : vector<8x256xf32>
    %c0_7 = arith.constant 0 : index
    %c0_8 = arith.constant 0 : index
    %40 = vector.load %arg3[%c0_7, %c0_8] : memref<8x256xf32, #tpu.memory_space<vmem>>, vector<8x256xf32>
    tpu.vector_store %arg3[%c0_7, %c0_8], %39 {strides = array<i32>} : memref<8x256xf32, #tpu.memory_space<vmem>>, vector<8x256xf32>,
    return
  }
  func.func @transform_0(%arg0: i32, %arg1: memref<8xf32, #tpu.memory_space<smem>>) -> (i32, i32) {
    %c0_i32 = arith.constant 0 : i32
    %c0_i32_0 = arith.constant 0 : i32
    return %arg0, %c0_i32 : i32, i32
  }
  func.func @transform_1(%arg0: i32, %arg1: memref<8xf32, #tpu.memory_space<smem>>) -> (i32, i32) {
    %c0_i32 = arith.constant 0 : i32
    %c0_i32_0 = arith.constant 0 : i32
    return %arg0, %c0_i32 : i32, i32
  }
}

</mosaic_0001>

<bundles_post_ra>
// kernel: optaeg_v3_forward.2
= control target key start
LH: loop header
LB: loop body
LE: loop exit
PB: predicated region body
PF: predicated region fallthrough
CT: control target
= control target key end

     0   :  { %8 = vsyncpa [#allocation3], 0  ;;  %s165_s0 = inlined_call_operand.vmem [shape: f32[8,256], index: 0, kind: input, shape index: {}]   ;;  %s166_s1 = inlined_call_operand.hbm [shape: f32[1,1], index: 1, kind: output, shape index: {0}]   ;;  %s167_s2 = inlined_call_operand.hbm [shape: f32[1,1], index: 2, kind: output, shape index: {1}]  }
   0x1   :  { %v19_v0 = vld [vmem:[%s165_s0] sm:$0xff]  ;;  %v20_v1 = vld [vmem:[%s165_s0 + $0x8] sm:$0xff] }
   0x2   :  { %9 = vsyncpa [#allocation5], 0  ;;  %v22_v2 = vadd.f32 %v20_v1, %v19_v0  ;;  %v37_v3 = vmul.f32 %v19_v0, %v19_v0  ;;  %v38_v4 = vmul.f32 %v20_v1, %v20_v1  ;;  %vm16_vm0 = vcmask 0   ;;  %s132_s0 = smov [#allocation2]   ;;  %s133_s15 = smov [#allocation4]  }
   0x3   :  { %v131_v6 = vmov 0.0   ;;  %s58_s13 = sshll.u32 %s132_s0, 4  ;;  %s68_s16 = sshll.u32 %s133_s15, 4  ;;  %s59_s13 = int_to_ptr.vmem [resolvable:$true] %s58_s13  ;;  %s69_s16 = int_to_ptr.vmem [resolvable:$true] %s68_s16 }
   0x4   :  { %23 = vadd.xlane.f32.xlu0 %v22_v2  ;;  %v39_v5 = vadd.f32 %v38_v4, %v37_v3  ;;  %17 = vst.msk [vmem:[#allocation2] sm:$0x1] %vm16_vm0, %v131_v6  ;;  %18 = vst.msk [vmem:[#allocation4] sm:$0x1] %vm16_vm0, %v131_v6  ;;  %s87_s18 = scalar_lea.vmem %s59_s13, 16  ;;  %s91_s19 = scalar_lea.vmem %s59_s13, 32 }
   0x5   :  { %p88_p0 = scmp.ne.s32.totalorder %s59_s13, %s87_s18  ;;  %p92_p1 = scmp.lt.s32.totalorder %s59_s13, %s59_s13 }
   0x6   :  { %p93_p2 = scmp.lt.s32.totalorder %s91_s19, %s87_s18 }
   0x8   :  { %40 = vadd.xlane.f32.xlu0 %v39_v5  ;;  %p94_p3 = por %p93_p2, %p92_p1 }
   0xa   :  { %p95_p4 = pnand %p94_p3, %p88_p0 }
   0xb   :  { %v21_v21 = vld [vmem:[#allocation2] sm:$0x1]  ;;  %v36_v24 = vld [vmem:[#allocation4] sm:$0x1] }
  0x8d   :  { %v24_v7 = vpop.xlane.xlu0 %23 }
  0x8e   :  { %v25_v8 = vrot.slane %v24_v7, 4 }
  0x90   :  { %v26_v9 = vadd.f32 %v25_v8, %v24_v7 }
  0x91   :  { %v41_v10 = vpop.xlane.xlu0 %40 }
  0x92   :  { %v27_v11 = vrot.slane %v26_v9, 2  ;;  %v42_v12 = vrot.slane %v41_v10, 4 }
  0x94   :  { %v43_v13 = vadd.f32 %v42_v12, %v41_v10  ;;  %v28_v14 = vadd.f32 %v27_v11, %v26_v9 }
  0x96   :  { %v44_v15 = vrot.slane %v43_v13, 2  ;;  %v29_v16 = vrot.slane %v28_v14, 1 }
  0x98   :  { %v45_v17 = vadd.f32 %v44_v15, %v43_v13  ;;  %v30_v18 = vadd.f32 %v29_v16, %v28_v14 }
  0x9a   :  { %80 = vpush %v30_v18  ;;  %v46_v19 = vrot.slane %v45_v17, 1 }
  0x9c   :  { %v47_v20 = vadd.f32 %v46_v19, %v45_v17 }
  0x9e   :  { %82 = vpush %v47_v20 }
  0xcb   :  { %s81_s14 = spop %80 }
  0xcc   :  { %v32_v22 = vstv %s81_s14 }
  0xcd   :  { %v33_v23 = vadd.f32 %v32_v22, %v21_v21 }
  0xcf   :  { %35 = vst.msk [vmem:[#allocation2] sm:$0x1] %vm16_vm0, %v33_v23  ;;  %s83_s17 = spop %82 }
  0xd0   :  { %v49_v25 = vstv %s83_s17 }
  0xd1   :  { %98 = shalt.err (!%p95_p4)
}
  0xd2   :  { %61 = dma.vmem_to_hbm [thread:$0]  %s59_s13, 16, %s166_s1, [#allocation3]   ;;  %v50_v26 = vadd.f32 %v49_v25, %v36_v24 }
  0xd3   :  { %s107_s22 = scalar_lea.vmem %s69_s16, 16  ;;  %s111_s23 = scalar_lea.vmem %s69_s16, 32 }
  0xd4   :  { %51 = vst.msk [vmem:[#allocation4] sm:$0x1] %vm16_vm0, %v50_v26  ;;  %p108_p5 = scmp.ne.s32.totalorder %s69_s16, %s107_s22  ;;  %p112_p6 = scmp.lt.s32.totalorder %s69_s16, %s69_s16 }
  0xd5   :  { %p113_p7 = scmp.lt.s32.totalorder %s111_s23, %s107_s22 }
  0xd7   :  { %p114_p8 = por %p113_p7, %p112_p6 }
  0xd9   :  { %p115_p9 = pnand %p114_p8, %p108_p5 }
  0xdb   :  { %118 = shalt.err (!%p115_p9)
}
  0xdc   :  { %71 = dma.vmem_to_hbm [thread:$0]  %s69_s16, 16, %s167_s2, [#allocation5]  }
  0xdd   :  { %127 = dma.done.wait [#allocation3], 16  }
  0xde   :  { %128 = vsyncadd [#allocation3], 4294967280 }
  0xdf   :  { %129 = dma.done.wait [#allocation5], 16  }
  0xe0   :  { %130 = vsyncadd [#allocation5], 4294967280 }
  0xe1   :  { %78 = vsyncpa [#allocation3], 1 }
  0xe2   :  { %79 = vsyncpa [#allocation5], 1 }

// kernel: optaeg_v3_forward.3
= control target key start
LH: loop header
LB: loop body
LE: loop exit
PB: predicated region body
PF: predicated region fallthrough
CT: control target
= control target key end

     0   :  { %s136_s0 = inlined_call_operand.vmem [shape: f32[8], index: 0, kind: input, shape index: {}]   ;;  %s137_s1 = inlined_call_operand.vmem [shape: f32[8,256], index: 1, kind: input, shape index: {}, may-alias: {1,2}]   ;;  %s138_s2 = inlined_call_operand.vmem [shape: f32[8,256], index: 2, kind: output, shape index: {}, may-alias: {1,2}]  }
   0x1   :  { %s7_s11 = sshll.u32 %s136_s0, 4  ;;  %s8_s11 = int_to_ptr.vmem [resolvable:$true] %s7_s11 }
   0x2   :  { %s91_s12 = scalar_lea.vmem %s8_s11, 16  ;;  %p96_p1 = scmp.lt.s32.totalorder %s8_s11, %s8_s11 }
   0x3   :  { %p92_p0 = scmp.ne.s32.totalorder %s8_s11, %s91_s12  ;;  %p97_p2 = scmp.lt.s32.totalorder %s91_s12, %s91_s12 }
   0x5   :  { %p98_p3 = por %p97_p2, %p96_p1 }
   0x7   :  { %p99_p4 = pnand %p98_p3, %p92_p0 }
   0x9   :  { %102 = shalt.err (!%p99_p4)  }
   0xa   :  { %s105_s13 = smov [#allocation3]  }
   0xb   :  { %10 = dma.vmem_to_smem %s8_s11, 16, %s105_s13, [#allocation2] }
   0xc   :  { %103 = dma.done.wait [#allocation2], 16 }
   0xd   :  { %104 = vsyncadd [#allocation2], 4294967280 }
   0xe   :  { %12 = sfence }
   0xf   :  { %s77_s14 = sld [smem:[#allocation3 + $0x3]]  ;;  %v23_v0 = vld [vmem:[%s137_s1] sm:$0xff]  ;;  %v24_v1 = vld [vmem:[%s137_s1 + $0x8] sm:$0xff] }
  0x10   :  { %s80_s15 = sld [smem:[#allocation3 + $0x6]] }
  0x11   :  { %s81_s16 = sld [smem:[#allocation3 + $0x7]] }
  0x12   :  { %s76_s17 = sld [smem:[#allocation3 + $0x2]] }
  0x13   :  { %s75_s22 = sld [smem:[#allocation3 + $0x1]] }
  0x14   :  { %s79_s23 = sld [smem:[#allocation3 + $0x5]] }
  0x15   :  { %s38_s0 = sadd.f32 1.0, %s77_s14 }
  0x16   :  { %v25_v2 = vstv %s80_s15  ;;  %s15_s1 = sld [smem:[#allocation3]] }
  0x17   :  { %v26_v3 = vsub.f32 %v23_v0, %v25_v2  ;;  %v28_v4 = vstv %s81_s16  ;;  %v27_v5 = vsub.f32 %v24_v1, %v25_v2  ;;  %v39_v6 = vstv %s38_s0  ;;  %s78_s25 = sld [smem:[#allocation3 + $0x4]] }
  0x18   :  { %v42_v9 = vstv %s76_s17 }
  0x19   :  { %v29_v7 = vmul.f32 %v28_v4, %v26_v3  ;;  %v30_v8 = vmul.f32 %v28_v4, %v27_v5  ;;  %s31_s24 = sadd.f32 1.0, %s75_s22 }
  0x1a   :  { %v60_v18 = vstv %s79_s23 }
  0x1b   :  { %v40_v10 = vmul.f32 %v39_v6, %v29_v7  ;;  %83 = vtanh.f32 %v29_v7  ;;  %v41_v11 = vmul.f32 %v39_v6, %v30_v8  ;;  %v32_v17 = vstv %s31_s24 }
  0x1c   :  { %85 = vtanh.f32 %v30_v8  ;;  %v33_v20 = vmul.f32 %v32_v17, %v29_v7  ;;  %v35_v22 = vstv %s15_s1  ;;  %v34_v23 = vmul.f32 %v32_v17, %v30_v8 }
  0x1d   :  { %v43_v12 = vadd.f32 %v42_v9, %v40_v10  ;;  %v44_v13 = vadd.f32 %v42_v9, %v41_v11  ;;  %v55_v34 = vstv %s78_s25 }
  0x1e   :  { %v36_v27 = vadd.f32 %v35_v22, %v33_v20  ;;  %v37_v30 = vadd.f32 %v35_v22, %v34_v23 }
  0x1f   :  { %v45_v14 = vmul.f32 0.5, %v43_v12  ;;  %v46_v15 = vmul.f32 0.5, %v44_v13 }
  0x21   :  { %87 = vtanh.f32 %v45_v14 }
  0x22   :  { %89 = vtanh.f32 %v46_v15 }
  0x28   :  { %v84_v16 = vpop.eup %83 }
  0x29   :  { %v86_v19 = vpop.eup %85  ;;  %v61_v21 = vmul.f32 %v84_v16, %v60_v18 }
  0x2a   :  { %v62_v24 = vmul.f32 %v86_v19, %v60_v18 }
  0x2b   :  { %v63_v29 = vadd.f32 1.0, %v61_v21 }
  0x2c   :  { %v64_v32 = vadd.f32 1.0, %v62_v24 }
  0x2d   :  { %v65_v37 = vmul.f32 %v63_v29, %v29_v7 }
  0x2e   :  { %v88_v25 = vpop.eup %87  ;;  %v66_v39 = vmul.f32 %v64_v32, %v30_v8 }
  0x2f   :  { %v90_v26 = vpop.eup %89  ;;  %v49_v28 = vmul.f32 0.5, %v88_v25 }
  0x30   :  { %v50_v31 = vmul.f32 0.5, %v90_v26 }
  0x31   :  { %v51_v33 = vadd.f32 0.5, %v49_v28 }
  0x32   :  { %v52_v35 = vadd.f32 0.5, %v50_v31 }
  0x33   :  { %v53_v36 = vmul.f32 %v51_v33, %v36_v27 }
  0x34   :  { %v54_v38 = vmul.f32 %v52_v35, %v37_v30 }
  0x35   :  { %v56_v40 = vmul.f32 %v55_v34, %v53_v36 }
  0x36   :  { %v57_v41 = vmul.f32 %v55_v34, %v54_v38 }
  0x37   :  { %v67_v42 = vadd.f32 %v65_v37, %v56_v40 }
  0x38   :  { %v68_v43 = vadd.f32 %v66_v39, %v57_v41 }
  0x39   :  { %69 = vst [vmem:[%s138_s2] sm:$0xff] %v67_v42 }
  0x3a   :  { %70 = vst [vmem:[%s138_s2 + $0x8] sm:$0xff] %v68_v43 }

</bundles_post_ra>
